<compile_context>
chip_gen: v5e
topology: v5e:2x2
jax: 0.10.0
libtpu: 0.0.40
codegen_flags: <defaults>
</compile_context>

<pallas_src>
import jax
import jax.numpy as jnp
from jax.experimental import pallas as pl
from jax.experimental.pallas import tpu as pltpu


def _round_up(x, m):
    return ((x + m - 1) // m) * m


def classifier_kernel(x_ref, mask_ref,
                      w1_ref, b1_ref,
                      w2_ref, b2_ref,
                      w3_ref, b3_ref,
                      out_ref):
    x = x_ref[...]                                     # [tm, 128] f32 (already .float())

    # fc1 + relu
    h1 = jnp.dot(x, w1_ref[...], preferred_element_type=jnp.float32) + b1_ref[...]
    h1 = jnp.maximum(h1, 0.0)

    # fc2 + relu
    h2 = jnp.dot(h1, w2_ref[...], preferred_element_type=jnp.float32) + b2_ref[...]
    h2 = jnp.maximum(h2, 0.0)

    # dropout: mask is 0 or 1/keep_prob (F.dropout training semantics), precomputed
    h2 = h2 * mask_ref[...]

    # fc3
    logits = jnp.dot(h2, w3_ref[...], preferred_element_type=jnp.float32) + b3_ref[...]

    # log_softmax over the last dim (F.log_softmax default for 2-D input)
    m = jnp.max(logits, axis=-1, keepdims=True)
    shifted = logits - m
    lse = jnp.log(jnp.sum(jnp.exp(shifted), axis=-1, keepdims=True))
    out_ref[...] = shifted - lse


def classifier_forward(x, params, dropout_key, *,
                       drop_rate=0.5, training=True, tile_m=256):
    """x: [batch, 126]. Returns log-probabilities [batch, class_num] (float32)."""
    w1, b1, w2, b2, w3, b3 = params
    batch, in_dim = x.shape
    hidden2 = w2.shape[1]          # 64
    class_num = w3.shape[1]

    # --- pad contraction dim 126 -> 128 (zeros contribute nothing to the dot) ---
    k_pad = _round_up(in_dim, 128)
    x = x.astype(jnp.float32)      # matches torch.Tensor(x).float()
    if k_pad != in_dim:
        x = jnp.pad(x, ((0, 0), (0, k_pad - in_dim)))
        w1 = jnp.pad(w1, ((0, k_pad - in_dim), (0, 0)))

    # --- batch tiling: pad batch up to a multiple of the tile size ---
    tile_m = min(tile_m, _round_up(batch, 8))
    b_pad = _round_up(batch, tile_m)
    if b_pad != batch:
        x = jnp.pad(x, ((0, b_pad - batch), (0, 0)))

    # --- dropout mask (0 or 1/keep_prob), generated outside the kernel ---
    keep_prob = 1.0 - drop_rate
    if training and drop_rate > 0.0:
        keep = jax.random.bernoulli(dropout_key, keep_prob, (b_pad, hidden2))
        mask = keep.astype(jnp.float32) * (1.0 / keep_prob)
    else:
        mask = jnp.ones((b_pad, hidden2), jnp.float32)

    grid = (b_pad // tile_m,)

    # weights/biases: constant index_map -> stay resident in VMEM across tiles
    def resident(arr):
        return pl.BlockSpec(arr.shape, lambda i: (0,) * arr.ndim)

    out = pl.pallas_call(
        classifier_kernel,
        out_shape=jax.ShapeDtypeStruct((b_pad, class_num), jnp.float32),
        grid=grid,
        in_specs=[
            pl.BlockSpec((tile_m, k_pad), lambda i: (i, 0)),     # x tile
            pl.BlockSpec((tile_m, hidden2), lambda i: (i, 0)),   # dropout mask tile
            resident(w1), resident(b1),
            resident(w2), resident(b2),
            resident(w3), resident(b3),
        ],
        out_specs=pl.BlockSpec((tile_m, class_num), lambda i: (i, 0)),
        compiler_params=pltpu.CompilerParams(
            dimension_semantics=("parallel",)),                   # shards tiles across TCs (v7x)
    )(x, mask, w1, b1, w2, b2, w3, b3)

    return out[:batch]


def init_params(key, class_num):
    """Deterministic init mimicking nn.Linear (uniform +-1/sqrt(fan_in)).
    Weights are returned already transposed to [in, out]; biases as [1, out]."""
    dims = [(126, 256), (256, 64), (64, class_num)]
    params = []
    for (fan_in, fan_out) in dims:
        key, kw, kb = jax.random.split(key, 3)
        bound = 1.0 / jnp.sqrt(jnp.float32(fan_in))
        w = jax.random.uniform(kw, (fan_in, fan_out), jnp.float32, -bound, bound)
        b = jax.random.uniform(kb, (1, fan_out), jnp.float32, -bound, bound)
        params += [w, b]
    return tuple(params)


if __name__ == "__main__":
    class_num = 10
    batch = 8

    key = jax.random.PRNGKey(0)
    key, kx, kdrop = jax.random.split(key, 3)
    x = jax.random.normal(kx, (batch, 126), jnp.float32)
    params = init_params(key, class_num)

    # training=True path (matches the module's default forward semantics)
    out_train = jax.block_until_ready(
        classifier_forward(x, params, kdrop, drop_rate=0.5, training=True))
    # eval path (dropout off) for a numerical check against a pure-JAX reference
    out_eval = jax.block_until_ready(
        classifier_forward(x, params, kdrop, drop_rate=0.5, training=False))

    assert out_train.shape == (batch, class_num)
    assert out_train.dtype == jnp.float32
    # rows of log_softmax must exp-sum to 1
    assert jnp.allclose(jnp.exp(out_train).sum(axis=-1), 1.0, atol=1e-4)

    # pure-JAX reference (no dropout)
    w1, b1, w2, b2, w3, b3 = params
    h1 = jnp.maximum(x @ w1 + b1, 0.0)
    h2 = jnp.maximum(h1 @ w2 + b2, 0.0)
    ref = jax.nn.log_softmax(h2 @ w3 + b3, axis=-1)
    assert jnp.allclose(out_eval, ref, atol=1e-4, rtol=1e-4)

    print("KERNEL_OK")
</pallas_src>

<mosaic_0001>
module attributes {stable_mosaic.version = 11 : i64} {
  func.func @classifier_kernel(%arg0: i32, %arg1: memref<8x128xf32, #tpu.memory_space<vmem>>, %arg2: memref<8x64xf32, #tpu.memory_space<vmem>>, %arg3: memref<128x256xf32, #tpu.memory_space<vmem>>, %arg4: memref<1x256xf32, #tpu.memory_space<vmem>>, %arg5: memref<256x64xf32, #tpu.memory_space<vmem>>, %arg6: memref<1x64xf32, #tpu.memory_space<vmem>>, %arg7: memref<64x10xf32, #tpu.memory_space<vmem>>, %arg8: memref<1x10xf32, #tpu.memory_space<vmem>>, %arg9: memref<8x10xf32, #tpu.memory_space<vmem>>) attributes {dimension_semantics = [#tpu.dimension_semantics<parallel>], iteration_bounds = array<i64: 1>, scalar_prefetch = 0 : i64, scratch_operands = 0 : i64, tpu.core_type = #tpu.core_type<tc>, window_params = [{transform_indices = @transform_0, window_bounds = array<i64: 8, 128>}, {transform_indices = @transform_1, window_bounds = array<i64: 8, 64>}, {pipeline_mode = #tpu.pipeline_mode<synchronous>, transform_indices = @transform_2, window_bounds = array<i64: 128, 256>}, {pipeline_mode = #tpu.pipeline_mode<synchronous>, transform_indices = @transform_3, window_bounds = array<i64: 1, 256>}, {pipeline_mode = #tpu.pipeline_mode<synchronous>, transform_indices = @transform_4, window_bounds = array<i64: 256, 64>}, {pipeline_mode = #tpu.pipeline_mode<synchronous>, transform_indices = @transform_5, window_bounds = array<i64: 1, 64>}, {pipeline_mode = #tpu.pipeline_mode<synchronous>, transform_indices = @transform_6, window_bounds = array<i64: 64, 10>}, {pipeline_mode = #tpu.pipeline_mode<synchronous>, transform_indices = @transform_7, window_bounds = array<i64: 1, 10>}, {transform_indices = @transform_8, window_bounds = array<i64: 8, 10>}]} {
    %c0 = arith.constant 0 : index
    %c0_0 = arith.constant 0 : index
    %0 = vector.load %arg1[%c0, %c0_0] : memref<8x128xf32, #tpu.memory_space<vmem>>, vector<8x128xf32>
    %c0_1 = arith.constant 0 : index
    %c0_2 = arith.constant 0 : index
    %1 = vector.load %arg3[%c0_1, %c0_2] : memref<128x256xf32, #tpu.memory_space<vmem>>, vector<128x256xf32>
    %cst = arith.constant dense<0.000000e+00> : vector<8x256xf32>
    %2 = tpu.matmul %0, %1, %cst {dimension_numbers = #tpu.dot_dimension_numbers<[1], [0], [0], [1], [0, 0, 1, 1], [], []>} : vector<8x128xf32>, vector<128x256xf32>, vector<8x256xf32> -> vector<8x256xf32>
    %c0_3 = arith.constant 0 : index
    %c0_4 = arith.constant 0 : index
    %3 = vector.load %arg4[%c0_3, %c0_4] : memref<1x256xf32, #tpu.memory_space<vmem>>, vector<1x256xf32>
    %4 = vector.broadcast %3 : vector<1x256xf32> to vector<8x256xf32>
    %5 = arith.addf %2, %4 : vector<8x256xf32>
    %cst_5 = arith.constant 0.000000e+00 : f32
    %6 = vector.broadcast %cst_5 : f32 to vector<8x256xf32>
    %7 = arith.maximumf %5, %6 : vector<8x256xf32>
    %c0_6 = arith.constant 0 : index
    %c0_7 = arith.constant 0 : index
    %8 = vector.load %arg5[%c0_6, %c0_7] : memref<256x64xf32, #tpu.memory_space<vmem>>, vector<256x64xf32>
    %cst_8 = arith.constant dense<0.000000e+00> : vector<8x64xf32>
    %9 = tpu.matmul %7, %8, %cst_8 {dimension_numbers = #tpu.dot_dimension_numbers<[1], [0], [0], [1], [0, 0, 1, 1], [], []>} : vector<8x256xf32>, vector<256x64xf32>, vector<8x64xf32> -> vector<8x64xf32>
    %c0_9 = arith.constant 0 : index
    %c0_10 = arith.constant 0 : index
    %10 = vector.load %arg6[%c0_9, %c0_10] : memref<1x64xf32, #tpu.memory_space<vmem>>, vector<1x64xf32>
    %11 = vector.broadcast %10 : vector<1x64xf32> to vector<8x64xf32>
    %12 = arith.addf %9, %11 : vector<8x64xf32>
    %cst_11 = arith.constant 0.000000e+00 : f32
    %13 = vector.broadcast %cst_11 : f32 to vector<8x64xf32>
    %14 = arith.maximumf %12, %13 : vector<8x64xf32>
    %c0_12 = arith.constant 0 : index
    %c0_13 = arith.constant 0 : index
    %15 = vector.load %arg2[%c0_12, %c0_13] : memref<8x64xf32, #tpu.memory_space<vmem>>, vector<8x64xf32>
    %16 = arith.mulf %14, %15 : vector<8x64xf32>
    %c0_14 = arith.constant 0 : index
    %c0_15 = arith.constant 0 : index
    %17 = vector.load %arg7[%c0_14, %c0_15] : memref<64x10xf32, #tpu.memory_space<vmem>>, vector<64x10xf32>
    %cst_16 = arith.constant dense<0.000000e+00> : vector<8x10xf32>
    %18 = tpu.matmul %16, %17, %cst_16 {dimension_numbers = #tpu.dot_dimension_numbers<[1], [0], [0], [1], [0, 0, 1, 1], [], []>} : vector<8x64xf32>, vector<64x10xf32>, vector<8x10xf32> -> vector<8x10xf32>
    %c0_17 = arith.constant 0 : index
    %c0_18 = arith.constant 0 : index
    %19 = vector.load %arg8[%c0_17, %c0_18] : memref<1x10xf32, #tpu.memory_space<vmem>>, vector<1x10xf32>
    %20 = vector.broadcast %19 : vector<1x10xf32> to vector<8x10xf32>
    %21 = arith.addf %18, %20 : vector<8x10xf32>
    %cst_19 = arith.constant dense<0xFF800000> : vector<8xf32>
    %22 = vector.multi_reduction <maximumf>, %21, %cst_19 [1] : vector<8x10xf32> to vector<8xf32>
    %23 = vector.shape_cast %22 : vector<8xf32> to vector<8x1xf32>
    %24 = vector.broadcast %23 : vector<8x1xf32> to vector<8x10xf32>
    %25 = arith.subf %21, %24 : vector<8x10xf32>
    %26 = math.exp %25 : vector<8x10xf32>
    %cst_20 = arith.constant dense<0.000000e+00> : vector<8xf32>
    %27 = vector.multi_reduction <add>, %26, %cst_20 [1] : vector<8x10xf32> to vector<8xf32>
    %28 = vector.shape_cast %27 : vector<8xf32> to vector<8x1xf32>
    %29 = math.log %28 : vector<8x1xf32>
    %30 = vector.broadcast %29 : vector<8x1xf32> to vector<8x10xf32>
    %31 = arith.subf %25, %30 : vector<8x10xf32>
    %c0_21 = arith.constant 0 : index
    %c0_22 = arith.constant 0 : index
    %32 = vector.load %arg9[%c0_21, %c0_22] : memref<8x10xf32, #tpu.memory_space<vmem>>, vector<8x10xf32>
    tpu.vector_store %arg9[%c0_21, %c0_22], %31 {strides = array<i32>} : memref<8x10xf32, #tpu.memory_space<vmem>>, vector<8x10xf32>,
    return
  }
  func.func @transform_0(%arg0: i32) -> (i32, i32) {
    %c0_i32 = arith.constant 0 : i32
    %c0_i32_0 = arith.constant 0 : i32
    return %arg0, %c0_i32 : i32, i32
  }
  func.func @transform_1(%arg0: i32) -> (i32, i32) {
    %c0_i32 = arith.constant 0 : i32
    %c0_i32_0 = arith.constant 0 : i32
    return %arg0, %c0_i32 : i32, i32
  }
  func.func @transform_2(%arg0: i32) -> (i32, i32) {
    %c0_i32 = arith.constant 0 : i32
    %c0_i32_0 = arith.constant 0 : i32
    %c0_i32_1 = arith.constant 0 : i32
    return %c0_i32, %c0_i32_0 : i32, i32
  }
  func.func @transform_3(%arg0: i32) -> (i32, i32) {
    %c0_i32 = arith.constant 0 : i32
    %c0_i32_0 = arith.constant 0 : i32
    %c0_i32_1 = arith.constant 0 : i32
    return %c0_i32, %c0_i32_0 : i32, i32
  }
  func.func @transform_4(%arg0: i32) -> (i32, i32) {
    %c0_i32 = arith.constant 0 : i32
    %c0_i32_0 = arith.constant 0 : i32
    %c0_i32_1 = arith.constant 0 : i32
    return %c0_i32, %c0_i32_0 : i32, i32
  }
  func.func @transform_5(%arg0: i32) -> (i32, i32) {
    %c0_i32 = arith.constant 0 : i32
    %c0_i32_0 = arith.constant 0 : i32
    %c0_i32_1 = arith.constant 0 : i32
    return %c0_i32, %c0_i32_0 : i32, i32
  }
  func.func @transform_6(%arg0: i32) -> (i32, i32) {
    %c0_i32 = arith.constant 0 : i32
    %c0_i32_0 = arith.constant 0 : i32
    %c0_i32_1 = arith.constant 0 : i32
    return %c0_i32, %c0_i32_0 : i32, i32
  }
  func.func @transform_7(%arg0: i32) -> (i32, i32) {
    %c0_i32 = arith.constant 0 : i32
    %c0_i32_0 = arith.constant 0 : i32
    %c0_i32_1 = arith.constant 0 : i32
    return %c0_i32, %c0_i32_0 : i32, i32
  }
  func.func @transform_8(%arg0: i32) -> (i32, i32) {
    %c0_i32 = arith.constant 0 : i32
    %c0_i32_0 = arith.constant 0 : i32
    return %arg0, %c0_i32 : i32, i32
  }
}

</mosaic_0001>

<bundles_post_ra>
// kernel: tpu_custom_call.1
= control target key start
LH: loop header
LB: loop body
LE: loop exit
PB: predicated region body
PF: predicated region fallthrough
CT: control target
= control target key end

     0   :  { %s573_s0 = inlined_call_operand.vmem [shape: f32[8,128], index: 0, kind: input, shape index: {}]   ;;  %s574_s1 = inlined_call_operand.vmem [shape: f32[8,64], index: 1, kind: input, shape index: {}]   ;;  %s575_s2 = inlined_call_operand.vmem [shape: f32[128,256], index: 2, kind: input, shape index: {}]   ;;  %s576_s3 = inlined_call_operand.vmem [shape: f32[1,256], index: 3, kind: input, shape index: {}]   ;;  %s577_s4 = inlined_call_operand.vmem [shape: f32[256,64], index: 4, kind: input, shape index: {}]   ;;  %s578_s5 = inlined_call_operand.vmem [shape: f32[1,64], index: 5, kind: input, shape index: {}]   ;;  %s579_s6 = inlined_call_operand.vmem [shape: f32[64,10], index: 6, kind: input, shape index: {}]   ;;  %s580_s7 = inlined_call_operand.vmem [shape: f32[1,10], index: 7, kind: input, shape index: {}]   ;;  %s581_s8 = inlined_call_operand.hbm [shape: f32[8,10], index: 8, kind: output, shape index: {}]  }
   0x1   :  { %v61_v0 = vld [vmem:[%s575_s2 + $0xf0] sm:$0xff]  ;;  %v59_v1 = vld [vmem:[%s575_s2 + $0xe0] sm:$0xff]  ;;  %v62_v2 = vld [vmem:[%s575_s2 + $0xf8] sm:$0xff] }
   0x2   :  { %69 = vmatpush.msra.mxu0 %v61_v0  ;;  %89 = vmatpush.msra.mxu1 %v62_v2  ;;  %v60_v3 = vld [vmem:[%s575_s2 + $0xe8] sm:$0xff]  ;;  %v57_v4 = vld [vmem:[%s575_s2 + $0xd0] sm:$0xff]  ;;  %v58_v5 = vld [vmem:[%s575_s2 + $0xd8] sm:$0xff] }
   0x3   :  { %v55_v6 = vld [vmem:[%s575_s2 + $0xc0] sm:$0xff]  ;;  %v56_v7 = vld [vmem:[%s575_s2 + $0xc8] sm:$0xff]  ;;  %v53_v8 = vld [vmem:[%s575_s2 + $0xb0] sm:$0xff] }
   0x4   :  { %70 = vmatpush.msra.mxu0 %v59_v1  ;;  %90 = vmatpush.msra.mxu1 %v60_v3  ;;  %v54_v9 = vld [vmem:[%s575_s2 + $0xb8] sm:$0xff]  ;;  %v51_v10 = vld [vmem:[%s575_s2 + $0xa0] sm:$0xff]  ;;  %v52_v11 = vld [vmem:[%s575_s2 + $0xa8] sm:$0xff] }
   0x5   :  { %v49_v12 = vld [vmem:[%s575_s2 + $0x90] sm:$0xff]  ;;  %v50_v13 = vld [vmem:[%s575_s2 + $0x98] sm:$0xff]  ;;  %v47_v17 = vld [vmem:[%s575_s2 + $0x80] sm:$0xff] }
   0x6   :  { %71 = vmatpush.msra.mxu0 %v57_v4  ;;  %91 = vmatpush.msra.mxu1 %v58_v5  ;;  %v126_v14 = vld [vmem:[%s577_s4 + $0x78] sm:$0xff]  ;;  %v125_v15 = vld [vmem:[%s577_s4 + $0x70] sm:$0xff]  ;;  %v48_v18 = vld [vmem:[%s575_s2 + $0x88] sm:$0xff] }
   0x7   :  { %v142_v16 = vld [vmem:[%s577_s4 + $0xf8] sm:$0xff]  ;;  %147 = vmatpush.msra.mxu2 %v126_v14  ;;  %v141_v19 = vld [vmem:[%s577_s4 + $0xf0] sm:$0xff]  ;;  %v124_v20 = vld [vmem:[%s577_s4 + $0x68] sm:$0xff] }
   0x8   :  { %72 = vmatpush.msra.mxu0 %v55_v6  ;;  %92 = vmatpush.msra.mxu1 %v56_v7  ;;  %v140_v21 = vld [vmem:[%s577_s4 + $0xe8] sm:$0xff]  ;;  %v45_v22 = vld [vmem:[%s575_s2 + $0x70] sm:$0xff]  ;;  %v46_v23 = vld [vmem:[%s575_s2 + $0x78] sm:$0xff] }
   0x9   :  { %167 = vmatpush.msra.mxu3 %v142_v16  ;;  %148 = vmatpush.msra.mxu2 %v125_v15  ;;  %v123_v24 = vld [vmem:[%s577_s4 + $0x60] sm:$0xff]  ;;  %v44_v27 = vld [vmem:[%s575_s2 + $0x68] sm:$0xff]  ;;  %v122_v28 = vld [vmem:[%s577_s4 + $0x58] sm:$0xff] }
   0xa   :  { %73 = vmatpush.msra.mxu0 %v53_v8  ;;  %93 = vmatpush.msra.mxu1 %v54_v9  ;;  %v139_v25 = vld [vmem:[%s577_s4 + $0xe0] sm:$0xff]  ;;  %v138_v29 = vld [vmem:[%s577_s4 + $0xd8] sm:$0xff]  ;;  %v41_v30 = vld [vmem:[%s575_s2 + $0x50] sm:$0xff] }
   0xb   :  { %168 = vmatpush.msra.mxu3 %v141_v19  ;;  %v43_v26 = vld [vmem:[%s575_s2 + $0x60] sm:$0xff]  ;;  %149 = vmatpush.msra.mxu2 %v124_v20  ;;  %v42_v32 = vld [vmem:[%s575_s2 + $0x58] sm:$0xff]  ;;  %v121_v33 = vld [vmem:[%s577_s4 + $0x50] sm:$0xff] }
   0xc   :  { %74 = vmatpush.msra.mxu0 %v51_v10  ;;  %94 = vmatpush.msra.mxu1 %v52_v11  ;;  %v39_v31 = vld [vmem:[%s575_s2 + $0x40] sm:$0xff]  ;;  %v137_v34 = vld [vmem:[%s577_s4 + $0xd0] sm:$0xff]  ;;  %v40_v35 = vld [vmem:[%s575_s2 + $0x48] sm:$0xff] }
   0xd   :  { %169 = vmatpush.msra.mxu3 %v140_v21  ;;  %150 = vmatpush.msra.mxu2 %v123_v24 }
   0xe   :  { %75 = vmatpush.msra.mxu0 %v49_v12  ;;  %95 = vmatpush.msra.mxu1 %v50_v13 }
   0xf   :  { %170 = vmatpush.msra.mxu3 %v139_v25  ;;  %151 = vmatpush.msra.mxu2 %v122_v28 }
  0x10   :  { %76 = vmatpush.msra.mxu0 %v47_v17  ;;  %96 = vmatpush.msra.mxu1 %v48_v18 }
  0x11   :  { %171 = vmatpush.msra.mxu3 %v138_v29 }
  0x12   :  { %77 = vmatpush.msra.mxu0 %v45_v22  ;;  %97 = vmatpush.msra.mxu1 %v46_v23 }
  0x14   :  { %78 = vmatpush.msra.mxu0 %v43_v26  ;;  %98 = vmatpush.msra.mxu1 %v44_v27 }
  0x15   :  { %13 = vsyncpa [#allocation3], 0  ;;  %v120_v36 = vld [vmem:[%s577_s4 + $0x48] sm:$0xff]  ;;  %v37_v38 = vld [vmem:[%s575_s2 + $0x30] sm:$0xff]  ;;  %152 = vmatpush.msra.mxu2 %v121_v33  ;;  %172 = vmatpush.msra.mxu3 %v137_v34  ;;  %vm202_vm0 = vcmask 523264   ;;  %vm226_vm1 = vcmask 80896  }
  0x16   :  { %79 = vmatpush.msra.mxu0 %v41_v30  ;;  %99 = vmatpush.msra.mxu1 %v42_v32  ;;  %v136_v37 = vld [vmem:[%s577_s4 + $0xc8] sm:$0xff]  ;;  %v38_v39 = vld [vmem:[%s575_s2 + $0x38] sm:$0xff]  ;;  %v119_v40 = vld [vmem:[%s577_s4 + $0x40] sm:$0xff]  ;;  %s247_s21 = sshll.u32 %s581_s8, 4  ;;  %s248_s21 = int_to_ptr.hbm [resolvable:$true] %s247_s21 }
  0x17   :  { %v135_v41 = vld [vmem:[%s577_s4 + $0xc0] sm:$0xff]  ;;  %v36_v43 = vld [vmem:[%s575_s2 + $0x28] sm:$0xff]  ;;  %153 = vmatpush.msra.mxu2 %v120_v36  ;;  %173 = vmatpush.msra.mxu3 %v136_v37  ;;  %v118_v44 = vld [vmem:[%s577_s4 + $0x38] sm:$0xff] }
  0x18   :  { %80 = vmatpush.msra.mxu0 %v39_v31  ;;  %100 = vmatpush.msra.mxu1 %v40_v35  ;;  %v35_v42 = vld [vmem:[%s575_s2 + $0x20] sm:$0xff]  ;;  %v134_v45 = vld [vmem:[%s577_s4 + $0xb8] sm:$0xff]  ;;  %v33_v46 = vld [vmem:[%s575_s2 + $0x10] sm:$0xff] }
  0x19   :  { %v34_v47 = vld [vmem:[%s575_s2 + $0x18] sm:$0xff]  ;;  %154 = vmatpush.msra.mxu2 %v119_v40  ;;  %174 = vmatpush.msra.mxu3 %v135_v41  ;;  %v117_v48 = vld [vmem:[%s577_s4 + $0x30] sm:$0xff]  ;;  %v31_v50 = vld [vmem:[%s575_s2] sm:$0xff] }
  0x1a   :  { %81 = vmatpush.msra.mxu0 %v37_v38  ;;  %101 = vmatpush.msra.mxu1 %v38_v39  ;;  %v133_v49 = vld [vmem:[%s577_s4 + $0xb0] sm:$0xff]  ;;  %v32_v51 = vld [vmem:[%s575_s2 + $0x8] sm:$0xff]  ;;  %v30_v52 = vld [vmem:[%s573_s0] sm:$0xff] }
  0x1b   :  { %155 = vmatpush.msra.mxu2 %v118_v44  ;;  %175 = vmatpush.msra.mxu3 %v134_v45  ;;  %v116_v53 = vld [vmem:[%s577_s4 + $0x28] sm:$0xff]  ;;  %v115_v55 = vld [vmem:[%s577_s4 + $0x20] sm:$0xff]  ;;  %v114_v57 = vld [vmem:[%s577_s4 + $0x18] sm:$0xff] }
  0x1c   :  { %82 = vmatpush.msra.mxu0 %v35_v42  ;;  %102 = vmatpush.msra.mxu1 %v36_v43  ;;  %v132_v54 = vld [vmem:[%s577_s4 + $0xa8] sm:$0xff]  ;;  %v131_v56 = vld [vmem:[%s577_s4 + $0xa0] sm:$0xff]  ;;  %v113_v58 = vld [vmem:[%s577_s4 + $0x10] sm:$0xff] }
  0x1d   :  { %156 = vmatpush.msra.mxu2 %v117_v48  ;;  %176 = vmatpush.msra.mxu3 %v133_v49  ;;  %v130_v59 = vld [vmem:[%s577_s4 + $0x98] sm:$0xff]  ;;  %v112_v60 = vld [vmem:[%s577_s4 + $0x8] sm:$0xff]  ;;  %v129_v61 = vld [vmem:[%s577_s4 + $0x90] sm:$0xff] }
  0x1e   :  { %83 = vmatpush.msra.mxu0 %v33_v46  ;;  %103 = vmatpush.msra.mxu1 %v34_v47  ;;  %v111_v62 = vld [vmem:[%s577_s4] sm:$0xff]  ;;  %v128_v63 = vld [vmem:[%s577_s4 + $0x88] sm:$0xff]  ;;  %v197_v1 = vld [vmem:[%s579_s6 + $0x38] sm:$0xff] }
  0x1f   :  { %157 = vmatpush.msra.mxu2 %v116_v53  ;;  %177 = vmatpush.msra.mxu3 %v132_v54  ;;  %v127_v0 = vld [vmem:[%s577_s4 + $0x80] sm:$0xff]  ;;  %v196_v2 = vld [vmem:[%s579_s6 + $0x30] sm:$0xff]  ;;  %v195_v3 = vld [vmem:[%s579_s6 + $0x28] sm:$0xff] }
  0x20   :  { %84 = vmatpush.msra.mxu0 %v31_v50  ;;  %104 = vmatpush.msra.mxu1 %v32_v51  ;;  %v63_v4 = vld [vmem:[%s576_s3] sm:$0x3]  ;;  %v193_v14 = vld [vmem:[%s579_s6 + $0x18] sm:$0xff]  ;;  %v192_v15 = vld [vmem:[%s579_s6 + $0x10] sm:$0xff] }
  0x21   :  { %85 = vmatmul.f32.vlgmr.msra.gmra.mxu0 %v30_v52  ;;  %105 = vmatmul.f32.vlgmr.msra.gmra.mxu1 %v30_v52  ;;  %v65_v5 = vperm.slane %v63_v4, 0  ;;  %v66_v6 = vperm.slane %v63_v4, 1  ;;  %v194_v13 = vld [vmem:[%s579_s6 + $0x20] sm:$0xff]  ;;  %v191_v16 = vld [vmem:[%s579_s6 + $0x8] sm:$0xff] }
  0x22   :  { %158 = vmatpush.msra.mxu2 %v115_v55  ;;  %178 = vmatpush.msra.mxu3 %v131_v56  ;;  %v190_v17 = vld [vmem:[%s579_s6] sm:$0xff] }
  0x23   :  { %214 = vmatpush.msrb.mxu0 %v197_v1  ;;  %v258_v18 = vld [vmem:[%s578_s5] ss:$0 sm:$0xff] }
  0x24   :  { %159 = vmatpush.msra.mxu2 %v114_v57  ;;  %179 = vmatpush.msra.mxu3 %v130_v59  ;;  %v188_v23 = vld [vmem:[%s574_s1] sm:$0xff]  ;;  %s290_s1 = smov [#allocation2]  }
  0x25   :  { %215 = vmatpush.msrb.mxu0 %v196_v2  ;;  %v259_v26 = vld [vmem:[%s580_s7] ss:$0 sm:$0xff]  ;;  %s245_s5 = sshll.u32 %s290_s1, 4  ;;  %s246_s5 = int_to_ptr.vmem [resolvable:$true] %s245_s5 }
  0x26   :  { %160 = vmatpush.msra.mxu2 %v113_v58  ;;  %180 = vmatpush.msra.mxu3 %v129_v61 }
  0x27   :  { %216 = vmatpush.msrb.mxu0 %v195_v3 }
  0x28   :  { %161 = vmatpush.msra.mxu2 %v112_v60  ;;  %181 = vmatpush.msra.mxu3 %v128_v63 }
  0x29   :  { %217 = vmatpush.msrb.mxu0 %v194_v13 }
  0x2a   :  { %162 = vmatpush.msra.mxu2 %v111_v62  ;;  %182 = vmatpush.msra.mxu3 %v127_v0 }
  0x2b   :  { %218 = vmatpush.msrb.mxu0 %v193_v14 }
  0x2d   :  { %219 = vmatpush.msrb.mxu0 %v192_v15 }
  0x2f   :  { %220 = vmatpush.msrb.mxu0 %v191_v16 }
  0x31   :  { %221 = vmatpush.msrb.mxu0 %v190_v17 }
  0x9e   :  { %v86_v7 = vpop.f32.mrf.mxu0  ;;  %v106_v8 = vpop.f32.mrf.mxu1 }
  0x9f   :  { %v87_v9 = vadd.f32 %v86_v7, %v65_v5  ;;  %v107_v10 = vadd.f32 %v106_v8, %v66_v6 }
  0xa1   :  { %v109_v11 = vmax.f32 %v87_v9, 0.0  ;;  %v110_v12 = vmax.f32 %v107_v10, 0.0 }
  0xa3   :  { %163 = vmatmul.f32.vlgmr.msra.gmra.mxu2 %v109_v11  ;;  %183 = vmatmul.f32.vlgmr.msra.gmra.mxu3 %v110_v12 }
 0x126   :  { %v164_v19 = vpop.f32.mrf.mxu2  ;;  %v184_v20 = vpop.f32.mrf.mxu3 }
 0x127   :  { %v165_v21 = vadd.f32 %v258_v18, %v164_v19 }
 0x129   :  { %v185_v22 = vadd.f32 %v184_v20, %v165_v21 }
 0x12b   :  { %v187_v24 = vmax.f32 %v185_v22, 0.0 }
 0x12d   :  { %v189_v25 = vmul.f32 %v188_v23, %v187_v24 }
 0x12f   :  { %256 = vmatmul.msk.f32.vlgmr.msrb.gmra.mxu0 %vm202_vm0, %v189_v25 }
 0x1ac   :  { %v223_v27 = vpop.f32.mrf.mxu0 }
 0x1ad   :  { %v224_v28 = vadd.f32 %v259_v26, %v223_v27 }
 0x1af   :  { %v227_v29 = vsel %vm226_vm1, %v224_v28, -inf }
 0x1b0   :  { %228 = vmax.xlane.f32.xlu0 %v227_v29 }
 0x223   :  { %v229_v30 = vpop.xlane.xlu0 %228 }
 0x224   :  { %v230_v31 = vsub.f32 %v224_v28, %v229_v30 }
 0x226   :  { %v231_v32 = vmul.f32 1.442695, %v230_v31 }
 0x228   :  { %260 = vpow2.f32 %v231_v32 }
 0x22e   :  { %v261_v33 = vpop.eup %260 }
 0x22f   :  { %v233_v34 = vsel %vm226_vm1, %v261_v33, 0.0 }
 0x230   :  { %234 = vadd.xlane.f32.xlu0 %v233_v34 }
 0x2a3   :  { %v235_v35 = vpop.xlane.xlu0 %234 }
 0x2a4   :  { %262 = vlog2.f32 %v235_v35 }
 0x2aa   :  { %v263_v36 = vpop.eup %262 }
 0x2ab   :  { %v237_v37 = vmul.f32 0.6931472, %v263_v36 }
 0x2ad   :  { %v238_v38 = vsub.f32 %v230_v31, %v237_v37 }
 0x2af   :  { %239 = vst.msk [vmem:[#allocation2] sm:$0xff] %vm226_vm1, %v238_v38 }
 0x2b0   :  { %250 = dma.vmem_to_hbm [thread:$0]  %s246_s5, 128, %s248_s21, [#allocation3]  }
 0x2b1   :  { %288 = dma.done.wait [#allocation3], 128  }
 0x2b2   :  { %289 = vsyncadd [#allocation3], 4294967168 }
 0x2b3   :  { %255 = vsyncpa [#allocation3], 1 }

</bundles_post_ra>
